<compile_context>
chip_gen: v6e
topology: v6e:2x2x1
jax: 0.10.0
libtpu: 0.0.40
codegen_flags: <defaults>
</compile_context>

<pallas_src>
import jax
import jax.numpy as jnp
from jax.experimental import pallas as pl
from jax.experimental.pallas import tpu as pltpu


def _round_up(v, m):
    return (v + m - 1) // m * m


def _round_down(v, m):
    return (v // m) * m


def _mlp_kernel(x_ref, wd_ref, bd_ref, o_ref):
    # x_ref: (bb, Z) VMEM; wd_ref: (Z, 1) VMEM; bd_ref: (1, 1) SMEM; o_ref: (bb, 2) VMEM
    x = x_ref[...].astype(jnp.float32)
    wd = wd_ref[...].astype(jnp.float32)            # w0 - w1, shape (Z, 1)
    bd = bd_ref[0, 0]                               # scalar b0 - b1 from SMEM

    # d = l0 - l1 : single MXU matmul (N = 1) + scalar bias difference.
    d = jnp.dot(x, wd, preferred_element_type=jnp.float32) + bd    # (bb, 1)

    # softmax([l0, l1])[0] == sigmoid(l0 - l1); module subtracts 0.5.
    t = jax.nn.sigmoid(d) - 0.5                                    # (bb, 1)

    # Direct column stores: no lane concatenate, minimal live vregs.
    o_ref[:, 0:1] = t.astype(o_ref.dtype)
    o_ref[:, 1:2] = (-t).astype(o_ref.dtype)


def my_mlp_forward(x, weight, bias, *, target_tile_bytes=8 * 1024 * 1024):
    """x: (B, Z) f32/bf16, weight: (2, Z) (PyTorch layout), bias: (2,)."""
    B, Z = x.shape
    assert weight.shape == (2, Z)
    assert bias.shape == (2,)
    out_units = 2

    # --- per-core VMEM budget (v7x: 64 MiB/TC; v5e/v6e: 128 MiB) ----------
    try:
        vmem_cap = int(pltpu.get_tpu_info().vmem_capacity_bytes)
    except Exception:
        vmem_cap = 64 * 1024 * 1024                 # conservative (v7x per TC)
    vmem_limit = min(48 * 1024 * 1024, (vmem_cap * 3) // 4)

    # --- batch-tile sizing by bytes ---------------------------------------
    # Sublane granularity depends on dtype packing (8 for f32, 16 for bf16, ...).
    itemsize = x.dtype.itemsize
    sublane = 8 if itemsize >= 4 else (32 // itemsize)

    z_lanes = _round_up(Z, 128)                     # VMEM pads last dim to 128 lanes
    x_row_bytes = z_lanes * itemsize
    out_row_bytes = 128 * 4                         # (bb, 2) f32 pads to 128 lanes
    per_row_bytes = 2 * x_row_bytes + 2 * out_row_bytes        # double-buffered
    fixed_bytes = 2 * _round_up(Z, 8) * 128 * 4                # resident w_diff

    bb_budget = max(((vmem_limit * 3) // 4 - fixed_bytes) // per_row_bytes, sublane)
    bb_target = max(target_tile_bytes // x_row_bytes, sublane)
    bb = min(bb_target, bb_budget, _round_up(B, sublane))
    # v7x megacore: prefer >= 2 grid steps so both TensorCores get work.
    if bb >= B and B > sublane:
        bb = _round_up(pl.cdiv(B, 2), sublane)
    bb = max(sublane, _round_down(bb, sublane))
    n_tiles = pl.cdiv(B, bb)                        # ragged last tile handled by Pallas

    # Fold the 2-class softmax into a logit-difference problem.
    w_diff = (weight[0, :] - weight[1, :]).reshape(Z, 1).astype(jnp.float32)
    b_diff = (bias[0] - bias[1]).reshape(1, 1).astype(jnp.float32)

    out = pl.pallas_call(
        _mlp_kernel,
        out_shape=jax.ShapeDtypeStruct((B, out_units), jnp.float32),
        grid=(n_tiles,),
        in_specs=[
            pl.BlockSpec((bb, Z), lambda i: (i, 0)),           # x: streamed per tile
            pl.BlockSpec((Z, 1), lambda i: (0, 0)),            # w_diff: resident
            pl.BlockSpec(memory_space=pltpu.MemorySpace.SMEM), # b_diff: scalar in SMEM
        ],
        out_specs=pl.BlockSpec((bb, out_units), lambda i: (i, 0)),
        compiler_params=pltpu.CompilerParams(
            dimension_semantics=("parallel",),                 # megacore split on v7x
            vmem_limit_bytes=vmem_limit,
        ),
    )(x, w_diff, b_diff)

    return out


if __name__ == "__main__":
    # Small, deterministic example consistent with the module: FC(Z -> 2).
    B, Z = 8, 32
    key = jax.random.PRNGKey(0)
    kx, kw, kb = jax.random.split(key, 3)

    x = jax.random.normal(kx, (B, Z), dtype=jnp.float32)

    # Deterministic parameter init (PyTorch nn.Linear default: U(-1/sqrt(Z), 1/sqrt(Z)))
    bound = 1.0 / (Z ** 0.5)
    weight = jax.random.uniform(kw, (2, Z), minval=-bound, maxval=bound,
                                dtype=jnp.float32)
    bias = jax.random.uniform(kb, (2,), minval=-bound, maxval=bound,
                              dtype=jnp.float32)

    out = my_mlp_forward(x, weight, bias)
    jax.block_until_ready(out)

    # Reference check in plain JAX (full softmax form).
    ref_logits = x @ weight.T + bias
    ref = jax.nn.softmax(ref_logits, axis=1) - 0.5
    assert out.shape == (B, 2)
    assert jnp.allclose(out, ref, atol=1e-5), "mismatch vs reference"

    print("KERNEL_OK")
</pallas_src>

<mosaic_0001>
module attributes {stable_mosaic.version = 11 : i64} {
  func.func @_mlp_kernel(%arg0: i32, %arg1: memref<8x32xf32, #tpu.memory_space<vmem>>, %arg2: memref<32x1xf32, #tpu.memory_space<vmem>>, %arg3: memref<1x1xf32, #tpu.memory_space<smem>>, %arg4: memref<8x2xf32, #tpu.memory_space<vmem>>) attributes {dimension_semantics = [#tpu.dimension_semantics<parallel>], iteration_bounds = array<i64: 1>, scalar_prefetch = 0 : i64, scratch_operands = 0 : i64, tpu.core_type = #tpu.core_type<tc>, window_params = [{transform_indices = @transform_0, window_bounds = array<i64: 8, 32>}, {pipeline_mode = #tpu.pipeline_mode<synchronous>, transform_indices = @transform_1, window_bounds = array<i64: 32, 1>}, {transform_indices = @transform_2, window_bounds = array<i64: 1, 1>}, {transform_indices = @transform_3, window_bounds = array<i64: 8, 2>}]} {
    %c0 = arith.constant 0 : index
    %c0_0 = arith.constant 0 : index
    %0 = vector.load %arg1[%c0, %c0_0] : memref<8x32xf32, #tpu.memory_space<vmem>>, vector<8x32xf32>
    %c0_1 = arith.constant 0 : index
    %c0_2 = arith.constant 0 : index
    %1 = vector.load %arg2[%c0_1, %c0_2] : memref<32x1xf32, #tpu.memory_space<vmem>>, vector<32x1xf32>
    %c0_3 = arith.constant 0 : index
    %c0_4 = arith.constant 0 : index
    %2 = memref.load %arg3[%c0_3, %c0_4] : memref<1x1xf32, #tpu.memory_space<smem>>
    %cst = arith.constant dense<0.000000e+00> : vector<8x1xf32>
    %3 = tpu.matmul %0, %1, %cst {dimension_numbers = #tpu.dot_dimension_numbers<[1], [0], [0], [1], [0, 0, 1, 1], [], []>} : vector<8x32xf32>, vector<32x1xf32>, vector<8x1xf32> -> vector<8x1xf32>
    %4 = vector.broadcast %2 : f32 to vector<8x1xf32>
    %5 = arith.addf %3, %4 : vector<8x1xf32>
    %6 = arith.negf %5 : vector<8x1xf32>
    %7 = math.exp %6 : vector<8x1xf32>
    %cst_5 = arith.constant 1.000000e+00 : f32
    %8 = vector.broadcast %cst_5 : f32 to vector<8x1xf32>
    %9 = arith.addf %8, %7 : vector<8x1xf32>
    %10 = arith.divf %8, %9 : vector<8x1xf32>
    %cst_6 = arith.constant 5.000000e-01 : f32
    %11 = vector.broadcast %cst_6 : f32 to vector<8x1xf32>
    %12 = arith.subf %10, %11 : vector<8x1xf32>
    %c0_7 = arith.constant 0 : index
    %c0_8 = arith.constant 0 : index
    %13 = vector.load %arg4[%c0_7, %c0_8] : memref<8x2xf32, #tpu.memory_space<vmem>>, vector<8x1xf32>
    tpu.vector_store %arg4[%c0_7, %c0_8], %12 {strides = array<i32>} : memref<8x2xf32, #tpu.memory_space<vmem>>, vector<8x1xf32>,
    %cst_9 = arith.constant 0.000000e+00 : f32
    %14 = vector.broadcast %cst_9 : f32 to vector<8x1xf32>
    %15 = arith.subf %14, %12 : vector<8x1xf32>
    %c0_10 = arith.constant 0 : index
    %c1 = arith.constant 1 : index
    %16 = vector.load %arg4[%c0_10, %c1] : memref<8x2xf32, #tpu.memory_space<vmem>>, vector<8x1xf32>
    tpu.vector_store %arg4[%c0_10, %c1], %15 {strides = array<i32>} : memref<8x2xf32, #tpu.memory_space<vmem>>, vector<8x1xf32>,
    return
  }
  func.func @transform_0(%arg0: i32) -> (i32, i32) {
    %c0_i32 = arith.constant 0 : i32
    %c0_i32_0 = arith.constant 0 : i32
    return %arg0, %c0_i32 : i32, i32
  }
  func.func @transform_1(%arg0: i32) -> (i32, i32) {
    %c0_i32 = arith.constant 0 : i32
    %c0_i32_0 = arith.constant 0 : i32
    %c0_i32_1 = arith.constant 0 : i32
    return %c0_i32, %c0_i32_0 : i32, i32
  }
  func.func @transform_2(%arg0: i32) -> (i32, i32) {
    %c0_i32 = arith.constant 0 : i32
    %c0_i32_0 = arith.constant 0 : i32
    %c0_i32_1 = arith.constant 0 : i32
    return %c0_i32, %c0_i32_0 : i32, i32
  }
  func.func @transform_3(%arg0: i32) -> (i32, i32) {
    %c0_i32 = arith.constant 0 : i32
    %c0_i32_0 = arith.constant 0 : i32
    return %arg0, %c0_i32 : i32, i32
  }
}

</mosaic_0001>

<bundles_post_ra>
// kernel: tpu_custom_call.1
= control target key start
LH: loop header
LB: loop body
LE: loop exit
PB: predicated region body
PF: predicated region fallthrough
CT: control target
= control target key end

     0   :  { %v142_v0 = vmov 0.0   ;;  %vm143_vm0 = vmmov 0   ;;  %vm22_vm1 = vcmask 261120   ;;  %vm103_vm2 = vcmask 7168   ;;  %s144_s24 = smov 1   ;;  %s189_s1 = inlined_call_operand.vmem [shape: f32[32,1], index: 1, kind: input, shape index: {}]   ;;  %s190_s0 = inlined_call_operand.vmem [shape: f32[8,32], index: 0, kind: input, shape index: {}]   ;;  %s191_s2 = inlined_call_operand.<no memory space> [shape: f32[1,1], index: 2, kind: input, shape index: {}]   ;;  %s192_s3 = inlined_call_operand.vmem [shape: f32[8,2], index: 3, kind: output, shape index: {}]  }
   0x1   :  { %124 = vmatprep.subr.mxu0 %v142_v0  ;;  %v19_v1 = vld [vmem:[%s189_s1 + $0x18] sm:$0xff]  ;;  %v18_v2 = vld [vmem:[%s189_s1 + $0x10] sm:$0xff]  ;;  %132 = vmatprep.mubr.msk.f32.mxu0 %vm143_vm0, %v142_v0  ;;  %v17_v3 = vld [vmem:[%s189_s1 + $0x8] sm:$0xff]  ;;  %v21_v6 = vstv %s191_s2  ;;  %vm110_vm3 = vcmask 15368  }
   0x2   :  { %125 = vmatpush3.msra.mxu0 %v19_v1  ;;  %v16_v4 = vld [vmem:[%s189_s1] sm:$0xff] }
   0x3   :  { %126 = vmatprep.subr.mxu0 %v142_v0  ;;  %v15_v5 = vld [vmem:[%s190_s0] sm:$0xff] }
   0x4   :  { %127 = vmatpush3.msra.mxu0 %v18_v2 }
   0x5   :  { %128 = vmatprep.subr.mxu0 %v142_v0 }
   0x6   :  { %129 = vmatpush3.msra.mxu0 %v17_v3 }
   0x7   :  { %130 = vmatprep.subr.mxu0 %v142_v0 }
   0x8   :  { %131 = vmatpush3.msra.mxu0 %v16_v4 }
   0x9   :  { %133 = vmatmul.mubr.msk.f32.vlgmr.msra.gmra.mxu0 %vm22_vm1, %v15_v5 }
  0xc9   :  { %v92_v7 = vpop.f32.mrf.mxu0 }
  0xca   :  { %v93_v8 = vadd.f32 %v92_v7, %v21_v6 }
  0xcb   :  { %v134_v9 = vpop.f32.mrf.mxu0 }
  0xcc   :  { %v117_v10 = vmul.f32 -1.442695, %v93_v8 }
  0xce   :  { %138 = vpow2.f32 %v117_v10 }
  0xdb   :  { %v139_v11 = vpop.eup %138 }
  0xdc   :  { %v99_v12 = vadd.f32 1.0, %v139_v11 }
  0xde   :  { %140 = vrcp.f32 %v99_v12 }
  0xeb   :  { %v141_v13 = vpop.eup %140 }
  0xec   :  { %v118_v14 = vadd.f32 -0.5, %v141_v13 }
  0xee   :  { %v105_v15 = vsub.f32 0.0, %v118_v14  ;;  %104 = vst.msk [vmem:[%s192_s3] sm:$0xff] %vm103_vm2, %v118_v14 }
  0xf0   :  { %107 = vrot.lane.b32.xlu0 %v105_v15, %s144_s24 }
 0x162   :  { %v108_v16 = vpop.permute.xlu0 %107 }
 0x163   :  { %111 = vst.msk [vmem:[%s192_s3] sm:$0xff] %vm110_vm3, %v108_v16 }

</bundles_post_ra>
